<compile_context>
chip_gen: v7x
topology: tpu7x:2x2x1
jax: 0.10.0
libtpu: 0.0.40
codegen_flags: <defaults>
</compile_context>

<pallas_src>
import numpy as np
import jax
import jax.numpy as jnp
from jax.experimental import pallas as pl
from jax.experimental.pallas import tpu as pltpu

# ---------------- configuration (small, forward-consistent shapes) -----------
N, C_IN, H, W = 2, 4, 16, 16
NUM_FEATURES = 32      # channels produced by the (stand-in) base model
DENSE_UNITS = 32
NUM_CLASSES = 10
KH = KW = 3            # conv kernel of the stand-in backbone (padding=1)

LANE = 128                      # lane-dense output width
K_ROW = (W + 2) * C_IN          # 72: one padded image row, (w', c) flattened
K_CAT = KH * K_ROW              # 216: three shifted rows concatenated
N_CONV = W * NUM_FEATURES       # 512: one conv output row, (w, f) flattened


# ---------------- fused Pallas kernel -----------------------------------------
def fused_forward_kernel(x_ref, wcat_ref, bc_ref, wp1_ref, b1_ref, w2_ref,
                         b2_ref, o_ref):
    """Whole forward pass for the whole batch, entirely in VMEM.

    x_ref   : (n, H+2, (W+2)*C) bf16  padded images, rows flattened over (w', c)
    wcat_ref: (3*(W+2)*C, W*F)  bf16  banded conv weights, dy-bands stacked on K
    bc_ref  : (1, W*F)          f32   conv bias tiled over w
    wp1_ref : (W*F, D)          bf16  fused pool(mean)+fc1 weight (already /H*W)
    b1_ref  : (1, D)            f32
    w2_ref  : (D, 128)          bf16  fc2 weight zero-padded to 128 lanes
    b2_ref  : (1, 128)          f32   fc2 bias zero-padded
    o_ref   : (8, 128)          f32   lane-dense logits slab (rows 0..n-1 valid)
    """
    x = x_ref[...]                                           # (n, 18, 72) bf16
    n = x.shape[0]

    # Conv3x3 (padding=1): in-kernel im2col over dy -> ONE MXU matmul, K=216.
    lhs = jnp.concatenate(
        [x[:, 0:H, :], x[:, 1:H + 1, :], x[:, 2:H + 2, :]], axis=-1)
    lhs = lhs.reshape(n * H, K_CAT)                          # (n*H, 216)
    conv = jnp.dot(lhs, wcat_ref[...],
                   preferred_element_type=jnp.float32)       # (n*H, W*F) f32
    conv = jnp.maximum(conv + bc_ref[...], 0.0)              # bias + ReLU

    # AdaptiveAvgPool2d((1,1)) + Flatten + Linear(F, D):
    # reduce over H first (XLU), then one skinny fc1 matmul; wp1 already folds
    # the 1/(H*W) mean and the w-tiling of fc1.
    pooled = jnp.sum(conv.reshape(n, H, N_CONV), axis=1)     # (n, W*F) f32
    h1 = jnp.dot(pooled.astype(jnp.bfloat16), wp1_ref[...],
                 preferred_element_type=jnp.float32) + b1_ref[...]   # (n, D)
    h1 = jnp.maximum(h1, 0.0)                                # ReLU
    # TODO(synk): nn.Dropout is identity in eval mode; stochastic training-mode
    #             mask (pltpu.prng_*) is intentionally not applied here.

    logits = jnp.dot(h1.astype(jnp.bfloat16), w2_ref[...],
                     preferred_element_type=jnp.float32) + b2_ref[...]  # (n,128)

    pad_rows = o_ref.shape[0] - n
    if pad_rows:                                             # static padding
        logits = jnp.concatenate(
            [logits, jnp.zeros((pad_rows, LANE), jnp.float32)], axis=0)
    o_ref[...] = logits                                      # one unmasked store


# ---------------- wrapper ------------------------------------------------------
def image_classification_forward(x_nchw, prep):
    n = x_nchw.shape[0]
    out_rows = ((n + 7) // 8) * 8                            # sublane-aligned slab

    x = jnp.transpose(x_nchw, (0, 2, 3, 1))                  # NHWC
    x = jnp.pad(x, ((0, 0), (1, 1), (1, 1), (0, 0)))         # (N, H+2, W+2, C)
    x = x.reshape(n, H + 2, K_ROW).astype(jnp.bfloat16)      # cast ONCE, in wrapper

    out = pl.pallas_call(
        fused_forward_kernel,
        out_shape=jax.ShapeDtypeStruct((out_rows, LANE), jnp.float32),
        grid=(1,),                                           # whole batch, one step
        in_specs=[
            pl.BlockSpec((n, H + 2, K_ROW), lambda i: (0, 0, 0)),
            pl.BlockSpec((K_CAT, N_CONV), lambda i: (0, 0)),
            pl.BlockSpec((1, N_CONV), lambda i: (0, 0)),
            pl.BlockSpec((N_CONV, DENSE_UNITS), lambda i: (0, 0)),
            pl.BlockSpec((1, DENSE_UNITS), lambda i: (0, 0)),
            pl.BlockSpec((DENSE_UNITS, LANE), lambda i: (0, 0)),
            pl.BlockSpec((1, LANE), lambda i: (0, 0)),
        ],
        out_specs=pl.BlockSpec((out_rows, LANE), lambda i: (0, 0)),
        compiler_params=pltpu.CompilerParams(
            dimension_semantics=("arbitrary",)),
    )(x, prep["wcat"], prep["bconv"], prep["wp1"], prep["b1"],
      prep["w2pad"], prep["b2pad"])

    return out[:n, :NUM_CLASSES]                             # (N, num_classes)


# ---------------- one-time weight re-layout (hoisted out of the hot path) ------
def prepare_params(params):
    f, c = NUM_FEATURES, C_IN
    cw = np.asarray(params["conv_w"], np.float32)            # (F, C, KH, KW)

    # Single fused banded conv weight, dy-bands stacked along K:
    #   wcat[dy*K_ROW + (w+dx)*C + ch, w*F + f] = conv_w[f, ch, dy, dx]
    wcat = np.zeros((K_CAT, N_CONV), np.float32)
    for dy in range(KH):
        for dx in range(KW):
            blk = cw[:, :, dy, dx].T                         # (C, F)
            for w_ in range(W):
                r0 = dy * K_ROW + (w_ + dx) * c
                wcat[r0:r0 + c, w_ * f:(w_ + 1) * f] = blk

    bconv = jnp.tile(params["conv_b"], (W,)).reshape(1, N_CONV)           # f32
    wp1 = (jnp.tile(params["fc1_w"].T, (W, 1)) / float(H * W))            # (W*F, D)
    w2pad = jnp.zeros((DENSE_UNITS, LANE), jnp.float32)
    w2pad = w2pad.at[:, :NUM_CLASSES].set(params["fc2_w"].T)
    b2pad = jnp.zeros((1, LANE), jnp.float32)
    b2pad = b2pad.at[0, :NUM_CLASSES].set(params["fc2_b"])

    return {
        "wcat": jnp.asarray(wcat).astype(jnp.bfloat16),
        "bconv": bconv.astype(jnp.float32),
        "wp1": wp1.astype(jnp.bfloat16),
        "b1": params["fc1_b"].reshape(1, DENSE_UNITS).astype(jnp.float32),
        "w2pad": w2pad.astype(jnp.bfloat16),
        "b2pad": b2pad,
    }


# ---------------- pure-JAX reference for a correctness sanity check ------------
def reference_forward(x_nchw, params):
    y = jax.lax.conv_general_dilated(
        x_nchw, params["conv_w"], window_strides=(1, 1), padding=((1, 1), (1, 1)),
        dimension_numbers=("NCHW", "OIHW", "NCHW"))
    y = jnp.maximum(y + params["conv_b"][None, :, None, None], 0.0)
    pooled = jnp.mean(y, axis=(2, 3))                                   # (N, F)
    h = jnp.maximum(pooled @ params["fc1_w"].T + params["fc1_b"], 0.0)
    return h @ params["fc2_w"].T + params["fc2_b"]


# ---------------- deterministic parameter init ---------------------------------
def init_params(key):
    ks = jax.random.split(key, 6)
    return {
        "conv_w": 0.05 * jax.random.normal(ks[0], (NUM_FEATURES, C_IN, KH, KW), jnp.float32),
        "conv_b": 0.01 * jax.random.normal(ks[1], (NUM_FEATURES,), jnp.float32),
        "fc1_w": 0.05 * jax.random.normal(ks[2], (DENSE_UNITS, NUM_FEATURES), jnp.float32),
        "fc1_b": 0.01 * jax.random.normal(ks[3], (DENSE_UNITS,), jnp.float32),
        "fc2_w": 0.05 * jax.random.normal(ks[4], (NUM_CLASSES, DENSE_UNITS), jnp.float32),
        "fc2_b": 0.01 * jax.random.normal(ks[5], (NUM_CLASSES,), jnp.float32),
    }


if __name__ == "__main__":
    key = jax.random.PRNGKey(0)
    k_x, k_p = jax.random.split(key)
    x = jax.random.normal(k_x, (N, C_IN, H, W), jnp.float32)   # NCHW like PyTorch
    params = init_params(k_p)
    prep = prepare_params(params)                              # once, off hot path

    fwd = jax.jit(image_classification_forward)
    logits = fwd(x, prep)
    jax.block_until_ready(logits)

    ref = reference_forward(x, params)
    assert logits.shape == (N, NUM_CLASSES)
    # bf16 MXU operands with f32 accumulation -> looser-than-f32 tolerance.
    assert jnp.allclose(logits, ref, atol=2e-2, rtol=2e-2), "mismatch vs JAX reference"
    print("KERNEL_OK")
</pallas_src>

<mosaic_0001>
module attributes {stable_mosaic.version = 11 : i64} {
  func.func @fused_forward_kernel(%arg0: i32, %arg1: memref<2x18x72xbf16, #tpu.memory_space<vmem>>, %arg2: memref<216x512xbf16, #tpu.memory_space<vmem>>, %arg3: memref<1x512xf32, #tpu.memory_space<vmem>>, %arg4: memref<512x32xbf16, #tpu.memory_space<vmem>>, %arg5: memref<1x32xf32, #tpu.memory_space<vmem>>, %arg6: memref<32x128xbf16, #tpu.memory_space<vmem>>, %arg7: memref<1x128xf32, #tpu.memory_space<vmem>>, %arg8: memref<8x128xf32, #tpu.memory_space<vmem>>) attributes {dimension_semantics = [#tpu.dimension_semantics<arbitrary>], iteration_bounds = array<i64: 1>, scalar_prefetch = 0 : i64, scratch_operands = 0 : i64, tpu.core_type = #tpu.core_type<tc>, window_params = [{pipeline_mode = #tpu.pipeline_mode<synchronous>, transform_indices = @transform_0, window_bounds = array<i64: 2, 18, 72>}, {pipeline_mode = #tpu.pipeline_mode<synchronous>, transform_indices = @transform_1, window_bounds = array<i64: 216, 512>}, {pipeline_mode = #tpu.pipeline_mode<synchronous>, transform_indices = @transform_2, window_bounds = array<i64: 1, 512>}, {pipeline_mode = #tpu.pipeline_mode<synchronous>, transform_indices = @transform_3, window_bounds = array<i64: 512, 32>}, {pipeline_mode = #tpu.pipeline_mode<synchronous>, transform_indices = @transform_4, window_bounds = array<i64: 1, 32>}, {pipeline_mode = #tpu.pipeline_mode<synchronous>, transform_indices = @transform_5, window_bounds = array<i64: 32, 128>}, {pipeline_mode = #tpu.pipeline_mode<synchronous>, transform_indices = @transform_6, window_bounds = array<i64: 1, 128>}, {pipeline_mode = #tpu.pipeline_mode<synchronous>, transform_indices = @transform_7, window_bounds = array<i64: 8, 128>}]} {
    %c0 = arith.constant 0 : index
    %c0_0 = arith.constant 0 : index
    %c0_1 = arith.constant 0 : index
    %0 = vector.load %arg1[%c0, %c0_0, %c0_1] : memref<2x18x72xbf16, #tpu.memory_space<vmem>>, vector<2x18x72xbf16>
    %1 = vector.extract_strided_slice %0 {offsets = [0, 0, 0], sizes = [2, 16, 72], strides = [1, 1, 1]} : vector<2x18x72xbf16> to vector<2x16x72xbf16>
    %2 = vector.extract_strided_slice %0 {offsets = [0, 1, 0], sizes = [2, 16, 72], strides = [1, 1, 1]} : vector<2x18x72xbf16> to vector<2x16x72xbf16>
    %3 = vector.extract_strided_slice %0 {offsets = [0, 2, 0], sizes = [2, 16, 72], strides = [1, 1, 1]} : vector<2x18x72xbf16> to vector<2x16x72xbf16>
    %4 = tpu.concatenate %1, %2, %3 in 2 : vector<2x16x72xbf16>, vector<2x16x72xbf16>, vector<2x16x72xbf16> -> vector<2x16x216xbf16>
    %5 = vector.shape_cast %4 : vector<2x16x216xbf16> to vector<32x216xbf16>
    %c0_2 = arith.constant 0 : index
    %c0_3 = arith.constant 0 : index
    %6 = vector.load %arg2[%c0_2, %c0_3] : memref<216x512xbf16, #tpu.memory_space<vmem>>, vector<216x512xbf16>
    %cst = arith.constant dense<0.000000e+00> : vector<32x512xf32>
    %7 = tpu.matmul %5, %6, %cst {dimension_numbers = #tpu.dot_dimension_numbers<[1], [0], [0], [1], [0, 0, 1, 1], [], []>} : vector<32x216xbf16>, vector<216x512xbf16>, vector<32x512xf32> -> vector<32x512xf32>
    %c0_4 = arith.constant 0 : index
    %c0_5 = arith.constant 0 : index
    %8 = vector.load %arg3[%c0_4, %c0_5] : memref<1x512xf32, #tpu.memory_space<vmem>>, vector<1x512xf32>
    %9 = vector.broadcast %8 : vector<1x512xf32> to vector<32x512xf32>
    %10 = arith.addf %7, %9 : vector<32x512xf32>
    %cst_6 = arith.constant 0.000000e+00 : f32
    %11 = vector.broadcast %cst_6 : f32 to vector<32x512xf32>
    %12 = arith.maximumf %10, %11 : vector<32x512xf32>
    %13 = vector.shape_cast %12 : vector<32x512xf32> to vector<2x16x512xf32>
    %cst_7 = arith.constant dense<0.000000e+00> : vector<2x512xf32>
    %14 = vector.multi_reduction <add>, %13, %cst_7 [1] : vector<2x16x512xf32> to vector<2x512xf32>
    %15 = arith.truncf %14 : vector<2x512xf32> to vector<2x512xbf16>
    %c0_8 = arith.constant 0 : index
    %c0_9 = arith.constant 0 : index
    %16 = vector.load %arg4[%c0_8, %c0_9] : memref<512x32xbf16, #tpu.memory_space<vmem>>, vector<512x32xbf16>
    %cst_10 = arith.constant dense<0.000000e+00> : vector<2x32xf32>
    %17 = tpu.matmul %15, %16, %cst_10 {dimension_numbers = #tpu.dot_dimension_numbers<[1], [0], [0], [1], [0, 0, 1, 1], [], []>} : vector<2x512xbf16>, vector<512x32xbf16>, vector<2x32xf32> -> vector<2x32xf32>
    %c0_11 = arith.constant 0 : index
    %c0_12 = arith.constant 0 : index
    %18 = vector.load %arg5[%c0_11, %c0_12] : memref<1x32xf32, #tpu.memory_space<vmem>>, vector<1x32xf32>
    %19 = vector.broadcast %18 : vector<1x32xf32> to vector<2x32xf32>
    %20 = arith.addf %17, %19 : vector<2x32xf32>
    %cst_13 = arith.constant 0.000000e+00 : f32
    %21 = vector.broadcast %cst_13 : f32 to vector<2x32xf32>
    %22 = arith.maximumf %20, %21 : vector<2x32xf32>
    %23 = arith.truncf %22 : vector<2x32xf32> to vector<2x32xbf16>
    %c0_14 = arith.constant 0 : index
    %c0_15 = arith.constant 0 : index
    %24 = vector.load %arg6[%c0_14, %c0_15] : memref<32x128xbf16, #tpu.memory_space<vmem>>, vector<32x128xbf16>
    %cst_16 = arith.constant dense<0.000000e+00> : vector<2x128xf32>
    %25 = tpu.matmul %23, %24, %cst_16 {dimension_numbers = #tpu.dot_dimension_numbers<[1], [0], [0], [1], [0, 0, 1, 1], [], []>} : vector<2x32xbf16>, vector<32x128xbf16>, vector<2x128xf32> -> vector<2x128xf32>
    %c0_17 = arith.constant 0 : index
    %c0_18 = arith.constant 0 : index
    %26 = vector.load %arg7[%c0_17, %c0_18] : memref<1x128xf32, #tpu.memory_space<vmem>>, vector<1x128xf32>
    %27 = vector.broadcast %26 : vector<1x128xf32> to vector<2x128xf32>
    %28 = arith.addf %25, %27 : vector<2x128xf32>
    %cst_19 = arith.constant 0.000000e+00 : f32
    %29 = vector.broadcast %cst_19 : f32 to vector<6x128xf32>
    %30 = tpu.concatenate %28, %29 in 0 : vector<2x128xf32>, vector<6x128xf32> -> vector<8x128xf32>
    %c0_20 = arith.constant 0 : index
    %c0_21 = arith.constant 0 : index
    %31 = vector.load %arg8[%c0_20, %c0_21] : memref<8x128xf32, #tpu.memory_space<vmem>>, vector<8x128xf32>
    tpu.vector_store %arg8[%c0_20, %c0_21], %30 {strides = array<i32>} : memref<8x128xf32, #tpu.memory_space<vmem>>, vector<8x128xf32>,
    return
  }
  func.func @transform_0(%arg0: i32) -> (i32, i32, i32) {
    %c0_i32 = arith.constant 0 : i32
    %c0_i32_0 = arith.constant 0 : i32
    %c0_i32_1 = arith.constant 0 : i32
    %c0_i32_2 = arith.constant 0 : i32
    return %c0_i32, %c0_i32_0, %c0_i32_1 : i32, i32, i32
  }
  func.func @transform_1(%arg0: i32) -> (i32, i32) {
    %c0_i32 = arith.constant 0 : i32
    %c0_i32_0 = arith.constant 0 : i32
    %c0_i32_1 = arith.constant 0 : i32
    return %c0_i32, %c0_i32_0 : i32, i32
  }
  func.func @transform_2(%arg0: i32) -> (i32, i32) {
    %c0_i32 = arith.constant 0 : i32
    %c0_i32_0 = arith.constant 0 : i32
    %c0_i32_1 = arith.constant 0 : i32
    return %c0_i32, %c0_i32_0 : i32, i32
  }
  func.func @transform_3(%arg0: i32) -> (i32, i32) {
    %c0_i32 = arith.constant 0 : i32
    %c0_i32_0 = arith.constant 0 : i32
    %c0_i32_1 = arith.constant 0 : i32
    return %c0_i32, %c0_i32_0 : i32, i32
  }
  func.func @transform_4(%arg0: i32) -> (i32, i32) {
    %c0_i32 = arith.constant 0 : i32
    %c0_i32_0 = arith.constant 0 : i32
    %c0_i32_1 = arith.constant 0 : i32
    return %c0_i32, %c0_i32_0 : i32, i32
  }
  func.func @transform_5(%arg0: i32) -> (i32, i32) {
    %c0_i32 = arith.constant 0 : i32
    %c0_i32_0 = arith.constant 0 : i32
    %c0_i32_1 = arith.constant 0 : i32
    return %c0_i32, %c0_i32_0 : i32, i32
  }
  func.func @transform_6(%arg0: i32) -> (i32, i32) {
    %c0_i32 = arith.constant 0 : i32
    %c0_i32_0 = arith.constant 0 : i32
    %c0_i32_1 = arith.constant 0 : i32
    return %c0_i32, %c0_i32_0 : i32, i32
  }
  func.func @transform_7(%arg0: i32) -> (i32, i32) {
    %c0_i32 = arith.constant 0 : i32
    %c0_i32_0 = arith.constant 0 : i32
    %c0_i32_1 = arith.constant 0 : i32
    return %c0_i32, %c0_i32_0 : i32, i32
  }
}

</mosaic_0001>

<bundles_post_ra>
// kernel: image_classification_forward.1
= control target key start
LH: loop header
LB: loop body
LE: loop exit
PB: predicated region body
PF: predicated region fallthrough
CT: control target
= control target key end

     0   :  { %vm49_vm0 = vsmask.f32 7424  ;;  %vm78_vm1 = vcmask 1046528   ;;  %s1381_s22 = smov 72   ;;  %s1382_s12 = smov 16   ;;  %vm452_vm2 = vcmask 1043456   ;;  %s1729_s0 = inlined_call_operand.vmem [shape: bf16[2,18,72], index: 0, kind: input, shape index: {}]   ;;  %s1730_s1 = inlined_call_operand.vmem [shape: bf16[216,512], index: 1, kind: input, shape index: {}]   ;;  %s1731_s3 = inlined_call_operand.vmem [shape: bf16[512,32], index: 3, kind: input, shape index: {}]   ;;  %s1732_s2 = inlined_call_operand.vmem [shape: f32[1,512], index: 2, kind: input, shape index: {}]   ;;  %s1733_s5 = inlined_call_operand.vmem [shape: bf16[32,128], index: 5, kind: input, shape index: {}]   ;;  %s1734_s4 = inlined_call_operand.vmem [shape: f32[1,32], index: 4, kind: input, shape index: {}]   ;;  %s1735_s6 = inlined_call_operand.vmem [shape: f32[1,128], index: 6, kind: input, shape index: {}]   ;;  %s1736_s7 = inlined_call_operand.vmem [shape: f32[8,128], index: 7, kind: output, shape index: {}]  }
   0x1   :  { %v1428_v0 = vld [vmem:[%s1729_s0] sm:$0xff]   ;;  %v1262_v1 = vld [vmem:[%s1729_s0 + $0x8] ss:$0 sps:$4 sm:$0x11]   ;;  %v1436_v2 = vld [vmem:[%s1729_s0 + $0xc] sm:$0xff]   ;;  %vm96_vm3 = vcmask 130048  }
   0x2   :  { %v51_v3 = vshrl.u32 %v1428_v0, 16  ;;  %v53_v4 = vshll.u32 %v1428_v0, 16  ;;  %v58_v5 = vshll.u32 %v1262_v1, 16  ;;  %v1264_v6 = vld [vmem:[%s1729_s0 + $0x14] ss:$0 sps:$4 sm:$0x11]  }
   0x3   :  { %v63_v7 = vshrl.u32 %v1436_v2, 16  ;;  %v65_v8 = vshll.u32 %v1436_v2, 16  ;;  %v70_v11 = vshll.u32 %v1264_v6, 16  ;;  %v79_v12 = vrot.slane %v1428_v0, 1  ;;  %v1265_v13 = vld [vmem:[%s1730_s1 + $0x4] ss:$16 sps:$4 sm:$0xff]  }
   0x4   :  { %v55_v9 = vrot.slane %v53_v4, 1  ;;  %v60_v10 = vrot.slane %v58_v5, 1  ;;  %v80_v15 = vrot.slane %v1262_v1, 1  ;;  %v1267_v16 = vld [vmem:[%s1730_s1 + $0xc] ss:$16 sps:$4 sm:$0xff]   ;;  %465 = vmatprep.subr.bf16.mxu0 %v1265_v13  ;;  %v82_v22 = vrot.slane %v1436_v2, 1 }
   0x5   :  { %v67_v14 = vrot.slane %v65_v8, 1  ;;  %v72_v18 = vrot.slane %v70_v11, 1  ;;  %v1269_v19 = vld [vmem:[%s1730_s1] ss:$16 sps:$4 sm:$0xff]   ;;  %v1270_v20 = vld [vmem:[%s1730_s1 + $0x8] ss:$16 sps:$4 sm:$0xff]   ;;  %518 = vmatprep.subr.bf16.mxu1 %v1267_v16 }
   0x6   :  { %v56_v17 = vor.u32 %v55_v9, %v51_v3  ;;  %v83_v23 = vrot.slane %v1264_v6, 1  ;;  %v1271_v24 = vld [vmem:[%s1730_s1 + $0x24] ss:$16 sps:$4 sm:$0xff]   ;;  %466 = vmatpush1.bf16.msra.mxu0 %v1269_v19  ;;  %519 = vmatpush1.bf16.msra.mxu1 %v1270_v20  ;;  %v1273_v26 = vld [vmem:[%s1730_s1 + $0x2c] ss:$16 sps:$4 sm:$0xff]   ;;  %v81_v30 = vsel %vm78_vm1, %v79_v12, %v80_v15  ;;  %vm447_vm4 = vcmask 719872  }
   0x7   :  { %v68_v21 = vor.u32 %v67_v14, %v63_v7  ;;  %v1275_v27 = vld [vmem:[%s1730_s1 + $0x20] ss:$16 sps:$4 sm:$0xff]   ;;  %467 = vmatprep.subr.bf16.mxu0 %v1271_v24  ;;  %v1276_v29 = vld [vmem:[%s1730_s1 + $0x28] ss:$16 sps:$4 sm:$0xff]   ;;  %520 = vmatprep.subr.bf16.mxu1 %v1273_v26  ;;  %v1277_v31 = vld [vmem:[%s1730_s1 + $0x44] ss:$16 sps:$4 sm:$0xff]  }
   0x8   :  { %v61_v25 = vsel %vm49_vm0, %v56_v17, %v60_v10  ;;  %v84_v32 = vsel %vm78_vm1, %v82_v22, %v83_v23  ;;  %v1279_v33 = vld [vmem:[%s1730_s1 + $0x4c] ss:$16 sps:$4 sm:$0xff]   ;;  %v1281_v34 = vld [vmem:[%s1730_s1 + $0x40] ss:$16 sps:$4 sm:$0xff]   ;;  %v1282_v35 = vld [vmem:[%s1730_s1 + $0x48] ss:$16 sps:$4 sm:$0xff]  }
   0x9   :  { %74 = vrot.lane.b32.xlu0 %v61_v25, %s1381_s22  ;;  %v73_v28 = vsel %vm49_vm0, %v68_v21, %v72_v18  ;;  %v1283_v36 = vld [vmem:[%s1730_s1 + $0x64] ss:$16 sps:$4 sm:$0xff]   ;;  %v1285_v37 = vld [vmem:[%s1730_s1 + $0x6c] ss:$16 sps:$4 sm:$0xff]   ;;  %v1287_v38 = vld [vmem:[%s1730_s1 + $0x60] ss:$16 sps:$4 sm:$0xff]  }
   0xa   :  { %76 = vrot.lane.b32.xlu1 %v73_v28, %s1381_s22  ;;  %468 = vmatpush1.bf16.msra.mxu0 %v1275_v27  ;;  %v1288_v39 = vld [vmem:[%s1730_s1 + $0x68] ss:$16 sps:$4 sm:$0xff]   ;;  %v1289_v40 = vld [vmem:[%s1730_s1 + $0x84] ss:$16 sps:$4 sm:$0xff]   ;;  %v1291_v41 = vld [vmem:[%s1730_s1 + $0x8c] ss:$16 sps:$4 sm:$0xff]  }
   0xb   :  { %521 = vmatpush1.bf16.msra.mxu1 %v1276_v29  ;;  %469 = vmatprep.subr.bf16.mxu0 %v1277_v31  ;;  %v1293_v42 = vld [vmem:[%s1730_s1 + $0x80] ss:$16 sps:$4 sm:$0xff]   ;;  %v1294_v43 = vld [vmem:[%s1730_s1 + $0x88] ss:$16 sps:$4 sm:$0xff]   ;;  %v1295_v44 = vld [vmem:[%s1730_s1 + $0xa4] ss:$16 sps:$4 sm:$0xff]  }
   0xc   :  { %522 = vmatprep.subr.bf16.mxu1 %v1279_v33  ;;  %v1297_v45 = vld [vmem:[%s1730_s1 + $0xac] ss:$16 sps:$4 sm:$0xff]   ;;  %v1299_v46 = vld [vmem:[%s1730_s1 + $0xa0] ss:$16 sps:$4 sm:$0xff]   ;;  %v1300_v47 = vld [vmem:[%s1730_s1 + $0xa8] ss:$16 sps:$4 sm:$0xff]  }
   0xd   :  { %85 = vrot.lane.b32.xlu0 %v81_v30, %s1382_s12  ;;  %v1301_v48 = vld [vmem:[%s1730_s1 + $0xc4] ss:$16 sps:$4 sm:$0xff]   ;;  %v1303_v49 = vld [vmem:[%s1730_s1 + $0xcc] ss:$16 sps:$4 sm:$0xff]   ;;  %v1305_v50 = vld [vmem:[%s1730_s1 + $0xc0] ss:$16 sps:$4 sm:$0xff]  }
   0xe   :  { %87 = vrot.lane.b32.xlu1 %v84_v32, %s1382_s12  ;;  %470 = vmatpush1.bf16.msra.mxu0 %v1281_v34  ;;  %v1306_v51 = vld [vmem:[%s1730_s1 + $0xc8] ss:$16 sps:$4 sm:$0xff]   ;;  %v1307_v52 = vld [vmem:[%s1730_s1 + $0xe4] ss:$16 sps:$4 sm:$0xff]   ;;  %v1309_v53 = vld [vmem:[%s1730_s1 + $0xec] ss:$16 sps:$4 sm:$0xff]  }
   0xf   :  { %523 = vmatpush1.bf16.msra.mxu1 %v1282_v35  ;;  %471 = vmatprep.subr.bf16.mxu0 %v1283_v36  ;;  %v1311_v54 = vld [vmem:[%s1730_s1 + $0xe0] ss:$16 sps:$4 sm:$0xff]   ;;  %v1312_v55 = vld [vmem:[%s1730_s1 + $0xe8] ss:$16 sps:$4 sm:$0xff]   ;;  %v1313_v56 = vld [vmem:[%s1730_s1 + $0x104] ss:$16 sps:$4 sm:$0xff]  }
  0x10   :  { %524 = vmatprep.subr.bf16.mxu1 %v1285_v37  ;;  %v1315_v57 = vld [vmem:[%s1730_s1 + $0x10c] ss:$16 sps:$4 sm:$0xff]   ;;  %v1317_v58 = vld [vmem:[%s1730_s1 + $0x100] ss:$16 sps:$4 sm:$0xff]   ;;  %v1318_v59 = vld [vmem:[%s1730_s1 + $0x108] ss:$16 sps:$4 sm:$0xff]  }
  0x11   :  { %v1319_v60 = vld [vmem:[%s1730_s1 + $0x124] ss:$16 sps:$4 sm:$0xff]   ;;  %v1321_v61 = vld [vmem:[%s1730_s1 + $0x12c] ss:$16 sps:$4 sm:$0xff]   ;;  %v1323_v62 = vld [vmem:[%s1730_s1 + $0x120] ss:$16 sps:$4 sm:$0xff]  }
  0x12   :  { %472 = vmatpush1.bf16.msra.mxu0 %v1287_v38  ;;  %v1324_v63 = vld [vmem:[%s1730_s1 + $0x128] ss:$16 sps:$4 sm:$0xff]   ;;  %v1325_v1 = vld [vmem:[%s1730_s1 + $0x144] ss:$16 sps:$4 sm:$0xff]   ;;  %v1327_v3 = vld [vmem:[%s1730_s1 + $0x14c] ss:$16 sps:$4 sm:$0xff]  }
  0x13   :  { %525 = vmatpush1.bf16.msra.mxu1 %v1288_v39  ;;  %473 = vmatprep.subr.bf16.mxu0 %v1289_v40  ;;  %v1329_v4 = vld [vmem:[%s1730_s1 + $0x140] ss:$16 sps:$4 sm:$0xff]   ;;  %v1330_v5 = vld [vmem:[%s1730_s1 + $0x148] ss:$16 sps:$4 sm:$0xff]   ;;  %v1331_v6 = vld [vmem:[%s1730_s1 + $0x164] ss:$16 sps:$4 sm:$0xff]  }
  0x14   :  { %526 = vmatprep.subr.bf16.mxu1 %v1291_v41  ;;  %v1333_v7 = vld [vmem:[%s1730_s1 + $0x16c] ss:$16 sps:$4 sm:$0xff]   ;;  %v1335_v8 = vld [vmem:[%s1730_s1 + $0x160] ss:$16 sps:$4 sm:$0xff]   ;;  %v1336_v9 = vld [vmem:[%s1730_s1 + $0x168] ss:$16 sps:$4 sm:$0xff]  }
  0x15   :  { %v1337_v10 = vld [vmem:[%s1730_s1 + $0x184] ss:$16 sps:$4 sm:$0xff]   ;;  %v1339_v11 = vld [vmem:[%s1730_s1 + $0x18c] ss:$16 sps:$4 sm:$0xff]   ;;  %v1341_v14 = vld [vmem:[%s1730_s1 + $0x180] ss:$16 sps:$4 sm:$0xff]  }
  0x16   :  { %474 = vmatpush1.bf16.msra.mxu0 %v1293_v42  ;;  %v153_v12 = vld [vmem:[%s1730_s1 + $0x1a0] sm:$0xff]  ;;  %v154_v13 = vld [vmem:[%s1730_s1 + $0x1a8] sm:$0xff]  ;;  %vm89_vm5 = vcmask 588800   ;;  %v1355_v36 = vld [vmem:[%s1731_s3 + $0x50] sm:$0xff]   ;;  %vm738_vm6 = vcmask 1041409   ;;  %vm1384_vm7 = vmmov 0  }
  0x17   :  { %527 = vmatpush1.bf16.msra.mxu1 %v1294_v43  ;;  %475 = vmatprep.subr.bf16.mxu0 %v1295_v44  ;;  %v1342_v15 = vld [vmem:[%s1730_s1 + $0x188] ss:$16 sps:$4 sm:$0xff]   ;;  %v1156_v16 = vcombine.high %v153_v12, %v153_v12  ;;  %v1158_v17 = vcombine.high %v154_v13, %v154_v13  ;;  %v1155_v18 = vcombine.low %v153_v12, %v153_v12  ;;  %v1347_v30 = vld [vmem:[%s1731_s3 + $0x40] sm:$0xff]   ;;  %v1356_v37 = vld [vmem:[%s1731_s3 + $0xd0] sm:$0xff]   ;;  %vm1048_vm8 = vcmask 261120  }
  0x18   :  { %528 = vmatprep.subr.bf16.mxu1 %v1297_v45  ;;  %v1157_v19 = vcombine.low %v154_v13, %v154_v13  ;;  %v1348_v31 = vld [vmem:[%s1731_s3 + $0xc0] sm:$0xff]   ;;  %v1351_v32 = vld [vmem:[%s1731_s3 + $0x48] sm:$0xff]   ;;  %v1357_v38 = vld [vmem:[%s1731_s3 + $0x10] sm:$0xff]   ;;  %vm1092_vm9 = vcmask 1041408  }
  0x19   :  { %v454_v20 = vsel %vm452_vm2, %v1155_v18, 0  ;;  %v1352_v33 = vld [vmem:[%s1731_s3 + $0xc8] sm:$0xff]   ;;  %v1358_v39 = vld [vmem:[%s1731_s3 + $0x90] sm:$0xff]   ;;  %v1359_v40 = vld [vmem:[%s1731_s3 + $0x58] sm:$0xff]  }
  0x1a   :  { %476 = vmatpush1.bf16.msra.mxu0 %v1299_v46  ;;  %v460_v21 = vsel %vm452_vm2, %v1157_v19, 0  ;;  %v1353_v34 = vld [vmem:[%s1731_s3 + $0x8] sm:$0xff]   ;;  %v1360_v41 = vld [vmem:[%s1731_s3 + $0xd8] sm:$0xff]   ;;  %v1363_v44 = vld [vmem:[%s1731_s3 + $0x60] sm:$0xff]  }
  0x1b   :  { %529 = vmatpush1.bf16.msra.mxu1 %v1300_v47  ;;  %477 = vmatprep.subr.bf16.mxu0 %v1301_v48  ;;  %v1354_v35 = vld [vmem:[%s1731_s3 + $0x88] sm:$0xff]   ;;  %v1361_v42 = vld [vmem:[%s1731_s3 + $0x18] sm:$0xff]   ;;  %v1364_v45 = vld [vmem:[%s1731_s3 + $0xe0] sm:$0xff]  }
  0x1c   :  { %530 = vmatprep.subr.bf16.mxu1 %v1303_v49  ;;  %v1362_v43 = vld [vmem:[%s1731_s3 + $0x98] sm:$0xff]   ;;  %v1365_v46 = vld [vmem:[%s1731_s3 + $0x20] sm:$0xff]   ;;  %v1367_v48 = vld [vmem:[%s1731_s3 + $0x68] sm:$0xff]  }
  0x1d   :  { %v1366_v47 = vld [vmem:[%s1731_s3 + $0xa0] sm:$0xff]   ;;  %v1368_v49 = vld [vmem:[%s1731_s3 + $0xe8] sm:$0xff]  }
  0x1e   :  { %478 = vmatpush1.bf16.msra.mxu0 %v1305_v50  ;;  %v1369_v50 = vld [vmem:[%s1731_s3 + $0x28] sm:$0xff]  }
  0x1f   :  { %531 = vmatpush1.bf16.msra.mxu1 %v1306_v51  ;;  %479 = vmatprep.subr.bf16.mxu0 %v1307_v52  ;;  %v1370_v51 = vld [vmem:[%s1731_s3 + $0xa8] sm:$0xff]   ;;  %v1371_v52 = vld [vmem:[%s1731_s3 + $0x70] sm:$0xff]  }
  0x20   :  { %532 = vmatprep.subr.bf16.mxu1 %v1309_v53  ;;  %v1372_v53 = vld [vmem:[%s1731_s3 + $0xf0] sm:$0xff]  }
  0x22   :  { %480 = vmatpush1.bf16.msra.mxu0 %v1311_v54  ;;  %v1373_v54 = vld [vmem:[%s1731_s3 + $0x30] sm:$0xff]  }
  0x23   :  { %533 = vmatpush1.bf16.msra.mxu1 %v1312_v55  ;;  %481 = vmatprep.subr.bf16.mxu0 %v1313_v56  ;;  %v1374_v55 = vld [vmem:[%s1731_s3 + $0xb0] sm:$0xff]   ;;  %v1375_v56 = vld [vmem:[%s1731_s3 + $0x78] sm:$0xff]  }
  0x24   :  { %534 = vmatprep.subr.bf16.mxu1 %v1315_v57  ;;  %v1376_v57 = vld [vmem:[%s1731_s3 + $0xf8] sm:$0xff]  }
  0x26   :  { %482 = vmatpush1.bf16.msra.mxu0 %v1317_v58  ;;  %v1377_v58 = vld [vmem:[%s1731_s3 + $0x38] sm:$0xff]  }
  0x27   :  { %535 = vmatpush1.bf16.msra.mxu1 %v1318_v59  ;;  %483 = vmatprep.subr.bf16.mxu0 %v1319_v60  ;;  %v1378_v59 = vld [vmem:[%s1731_s3 + $0xb8] sm:$0xff]   ;;  %v157_v60 = vlaneseq }
  0x28   :  { %536 = vmatprep.subr.bf16.mxu1 %v1321_v61 }
  0x29   :  { %v158_v61 = vshrl.u32 %v157_v60, 7 }
  0x2a   :  { %484 = vmatpush1.bf16.msra.mxu0 %v1323_v62 }
  0x2b   :  { %537 = vmatpush1.bf16.msra.mxu1 %v1324_v63  ;;  %485 = vmatprep.subr.bf16.mxu0 %v1325_v1  ;;  %v159_v62 = vsub.s32 0, %v158_v61  ;;  %v167_v63 = vsub.s32 2, %v158_v61  ;;  %v155_v1 = vld [vmem:[%s1732_s2] sm:$0xf] }
  0x2c   :  { %538 = vmatprep.subr.bf16.mxu1 %v1327_v3  ;;  %v163_v3 = vsub.s32 1, %v158_v61 }
  0x2e   :  { %486 = vmatpush1.bf16.msra.mxu0 %v1329_v4  ;;  %v171_v4 = vsub.s32 3, %v158_v61 }
  0x2f   :  { %539 = vmatpush1.bf16.msra.mxu1 %v1330_v5  ;;  %487 = vmatprep.subr.bf16.mxu0 %v1331_v6  ;;  %v160_v5 = vrot.slane %v155_v1, %v159_v62  ;;  %v168_v6 = vrot.slane %v155_v1, %v167_v63 }
  0x30   :  { %540 = vmatprep.subr.bf16.mxu1 %v1333_v7  ;;  %v164_v7 = vrot.slane %v155_v1, %v163_v3 }
  0x32   :  { %488 = vmatpush1.bf16.msra.mxu0 %v1335_v8  ;;  %v172_v8 = vrot.slane %v155_v1, %v171_v4 }
  0x33   :  { %541 = vmatpush1.bf16.msra.mxu1 %v1336_v9  ;;  %489 = vmatprep.subr.bf16.mxu0 %v1337_v10 }
  0x34   :  { %542 = vmatprep.subr.bf16.mxu1 %v1339_v11 }
  0x36   :  { %490 = vmatpush1.bf16.msra.mxu0 %v1341_v14 }
  0x37   :  { %543 = vmatpush1.bf16.msra.mxu1 %v1342_v15  ;;  %1159 = vmatprep.subr.msk.bf16.mxu0 %vm452_vm2, %v1156_v16 }
  0x38   :  { %1162 = vmatprep.subr.msk.bf16.mxu1 %vm452_vm2, %v1158_v17 }
  0x3a   :  { %492 = vmatpush1.bf16.msra.mxu0 %v454_v20 }
  0x3b   :  { %545 = vmatpush1.bf16.msra.mxu1 %v460_v21  ;;  %1202 = vmatprep.subr.bf16.mxu0 %v1347_v30 }
  0x3c   :  { %1224 = vmatprep.subr.bf16.mxu1 %v1348_v31 }
  0x7b   :  { %v75_v22 = vpop.permute.xlu0 %74 }
  0x7c   :  { %v77_v23 = vpop.permute.xlu1 %76  ;;  %v91_v27 = vsel %vm89_vm5, %v1428_v0, %v75_v22  ;;  %v1349_v0 = vld [vmem:[%s1731_s3] sm:$0xff]  }
  0x7d   :  { %v94_v29 = vsel %vm89_vm5, %v1436_v2, %v77_v23  ;;  %v1350_v2 = vld [vmem:[%s1731_s3 + $0x80] sm:$0xff]  }
  0x7f   :  { %v86_v24 = vpop.permute.xlu0 %85 }
  0x80   :  { %v98_v25 = vsel %vm96_vm3, %v75_v22, %v86_v24  ;;  %v88_v26 = vpop.permute.xlu1 %87 }
  0x81   :  { %1160 = vmatprep.mubr.msk.bf16.mxu0 %vm447_vm4, %v98_v25  ;;  %1163 = vmatprep.mubr.msk.bf16.mxu1 %vm447_vm4, %v98_v25  ;;  %v100_v28 = vsel %vm96_vm3, %v77_v23, %v88_v26 }
  0x82   :  { %498 = vmatmul.mubr.bf16.vlgmr.msra.gmra.mrb[0].mxu0 %v91_v27  ;;  %551 = vmatmul.mubr.bf16.vlgmr.msra.gmra.mrb[0].mxu1 %v91_v27 }
  0x83   :  { %1161 = vmatprep.mubr.msk.bf16.mxu0 %vm447_vm4, %v100_v28  ;;  %1164 = vmatprep.mubr.msk.bf16.mxu1 %vm447_vm4, %v100_v28 }
  0x84   :  { %1203 = vmatpush3.bf16.msra.mxu0 %v1349_v0  ;;  %1225 = vmatpush3.bf16.msra.mxu1 %v1350_v2 }
  0x85   :  { %1204 = vmatprep.subr.bf16.mxu0 %v1351_v32  ;;  %1226 = vmatprep.subr.bf16.mxu1 %v1352_v33 }
  0x88   :  { %1205 = vmatpush3.bf16.msra.mxu0 %v1353_v34  ;;  %1227 = vmatpush3.bf16.msra.mxu1 %v1354_v35 }
  0x89   :  { %1206 = vmatprep.subr.bf16.mxu0 %v1355_v36  ;;  %1228 = vmatprep.subr.bf16.mxu1 %v1356_v37 }
  0x8a   :  { %508 = vmatmul.mubr.bf16.gmra.mrb[4].mxu0 %v94_v29  ;;  %561 = vmatmul.mubr.bf16.gmra.mrb[4].mxu1 %v94_v29 }
  0x8c   :  { %1207 = vmatpush3.bf16.msra.mxu0 %v1357_v38  ;;  %1229 = vmatpush3.bf16.msra.mxu1 %v1358_v39 }
  0x8d   :  { %1208 = vmatprep.subr.bf16.mxu0 %v1359_v40  ;;  %1230 = vmatprep.subr.bf16.mxu1 %v1360_v41 }
  0x90   :  { %1209 = vmatpush3.bf16.msra.mxu0 %v1361_v42  ;;  %1231 = vmatpush3.bf16.msra.mxu1 %v1362_v43 }
  0x91   :  { %1210 = vmatprep.subr.bf16.mxu0 %v1363_v44  ;;  %1232 = vmatprep.subr.bf16.mxu1 %v1364_v45 }
  0x94   :  { %1211 = vmatpush3.bf16.msra.mxu0 %v1365_v46  ;;  %1233 = vmatpush3.bf16.msra.mxu1 %v1366_v47 }
  0x95   :  { %1212 = vmatprep.subr.bf16.mxu0 %v1367_v48  ;;  %1234 = vmatprep.subr.bf16.mxu1 %v1368_v49 }
  0x98   :  { %1213 = vmatpush3.bf16.msra.mxu0 %v1369_v50  ;;  %1235 = vmatpush3.bf16.msra.mxu1 %v1370_v51 }
  0x99   :  { %1214 = vmatprep.subr.bf16.mxu0 %v1371_v52  ;;  %1236 = vmatprep.subr.bf16.mxu1 %v1372_v53 }
  0x9c   :  { %1215 = vmatpush3.bf16.msra.mxu0 %v1373_v54  ;;  %1237 = vmatpush3.bf16.msra.mxu1 %v1374_v55 }
  0x9d   :  { %1216 = vmatprep.subr.bf16.mxu0 %v1375_v56  ;;  %1238 = vmatprep.subr.bf16.mxu1 %v1376_v57 }
  0xa0   :  { %1217 = vmatpush3.bf16.msra.mxu0 %v1377_v58  ;;  %1239 = vmatpush3.bf16.msra.mxu1 %v1378_v59 }
 0x155   :  { %v499_v9 = vpop.f32.mrb[0].mxu0  ;;  %v552_v10 = vpop.f32.mrb[0].mxu1 }
 0x156   :  { %v500_v11 = vadd.f32 %v499_v9, %v160_v5  ;;  %v553_v12 = vadd.f32 %v552_v10, %v168_v6  ;;  %v501_v13 = vpop.f32.mrb[1].mxu0  ;;  %v554_v14 = vpop.f32.mrb[1].mxu1 }
 0x157   :  { %v502_v15 = vadd.f32 %v501_v13, %v164_v7  ;;  %v555_v16 = vadd.f32 %v554_v14, %v172_v8  ;;  %v503_v17 = vpop.f32.mrb[2].mxu0  ;;  %v556_v18 = vpop.f32.mrb[2].mxu1 }
 0x158   :  { %v504_v19 = vadd.f32 %v503_v17, %v160_v5  ;;  %v557_v20 = vadd.f32 %v556_v18, %v168_v6  ;;  %v505_v21 = vpop.f32.mrb[3].mxu0  ;;  %v558_v22 = vpop.f32.mrb[3].mxu1  ;;  %v571_v25 = vmax.f32 %v500_v11, 0.0  ;;  %v573_v26 = vmax.f32 %v553_v12, 0.0 }
 0x159   :  { %v506_v23 = vadd.f32 %v505_v21, %v164_v7  ;;  %v559_v24 = vadd.f32 %v558_v22, %v172_v8  ;;  %v572_v29 = vmax.f32 %v502_v15, 0.0  ;;  %v574_v30 = vmax.f32 %v555_v16, 0.0 }
 0x15a   :  { %v575_v27 = vmax.f32 %v504_v19, 0.0  ;;  %v577_v28 = vmax.f32 %v557_v20, 0.0 }
 0x15b   :  { %v576_v31 = vmax.f32 %v506_v23, 0.0  ;;  %v578_v0 = vmax.f32 %v559_v24, 0.0 }
 0x15c   :  { %v587_v2 = vadd.f32 %v575_v27, %v571_v25  ;;  %v601_v32 = vadd.f32 %v577_v28, %v573_v26 }
 0x15d   :  { %v594_v33 = vadd.f32 %v576_v31, %v572_v29  ;;  %v608_v34 = vadd.f32 %v578_v0, %v574_v30  ;;  %v509_v35 = vpop.f32.mrb[4].mxu0  ;;  %v562_v36 = vpop.f32.mrb[4].mxu1 }
 0x15e   :  { %v588_v37 = vrot.slane %v587_v2, 4  ;;  %v602_v38 = vrot.slane %v601_v32, 4  ;;  %v511_v39 = vpop.f32.mrb[5].mxu0  ;;  %v564_v40 = vpop.f32.mrb[5].mxu1  ;;  %v510_v47 = vadd.f32 %v509_v35, %v160_v5  ;;  %v563_v48 = vadd.f32 %v562_v36, %v168_v6 }
 0x15f   :  { %v595_v41 = vrot.slane %v594_v33, 4  ;;  %v609_v42 = vrot.slane %v608_v34, 4  ;;  %v513_v43 = vpop.f32.mrb[6].mxu0  ;;  %v566_v44 = vpop.f32.mrb[6].mxu1  ;;  %v512_v53 = vadd.f32 %v511_v39, %v164_v7  ;;  %v565_v54 = vadd.f32 %v564_v40, %v172_v8 }
 0x160   :  { %v589_v45 = vadd.f32 %v588_v37, %v587_v2  ;;  %v603_v46 = vadd.f32 %v602_v38, %v601_v32  ;;  %v515_v49 = vpop.f32.mrb[7].mxu0  ;;  %v568_v50 = vpop.f32.mrb[7].mxu1  ;;  %v514_v57 = vadd.f32 %v513_v43, %v160_v5  ;;  %v567_v58 = vadd.f32 %v566_v44, %v168_v6 }
 0x161   :  { %v596_v51 = vadd.f32 %v595_v41, %v594_v33  ;;  %v610_v52 = vadd.f32 %v609_v42, %v608_v34  ;;  %v516_v61 = vadd.f32 %v515_v49, %v164_v7  ;;  %v569_v62 = vadd.f32 %v568_v50, %v172_v8 }
 0x162   :  { %v590_v55 = vrot.slane %v589_v45, 2  ;;  %v604_v56 = vrot.slane %v603_v46, 2  ;;  %v579_v63 = vmax.f32 %v510_v47, 0.0  ;;  %v581_v1 = vmax.f32 %v563_v48, 0.0 }
 0x163   :  { %v597_v59 = vrot.slane %v596_v51, 2  ;;  %v611_v60 = vrot.slane %v610_v52, 2  ;;  %v583_v3 = vmax.f32 %v514_v57, 0.0  ;;  %v585_v4 = vmax.f32 %v567_v58, 0.0 }
 0x164   :  { %v580_v9 = vmax.f32 %v512_v53, 0.0  ;;  %v582_v10 = vmax.f32 %v565_v54, 0.0  ;;  %v584_v11 = vmax.f32 %v516_v61, 0.0  ;;  %v586_v12 = vmax.f32 %v569_v62, 0.0 }
 0x165   :  { %v591_v13 = vadd.f32 %v590_v55, %v589_v45  ;;  %v605_v14 = vadd.f32 %v604_v56, %v603_v46  ;;  %v615_v15 = vadd.f32 %v583_v3, %v579_v63  ;;  %v629_v16 = vadd.f32 %v585_v4, %v581_v1 }
 0x166   :  { %v598_v17 = vadd.f32 %v597_v59, %v596_v51  ;;  %v612_v18 = vadd.f32 %v611_v60, %v610_v52  ;;  %v622_v5 = vadd.f32 %v584_v11, %v580_v9  ;;  %v636_v6 = vadd.f32 %v586_v12, %v582_v10 }
 0x167   :  { %v616_v19 = vrot.slane %v615_v15, 4  ;;  %v630_v20 = vrot.slane %v629_v16, 4  ;;  %v592_v21 = vrot.slane %v591_v13, 1  ;;  %v606_v22 = vrot.slane %v605_v14, 1 }
 0x168   :  { %v623_v7 = vrot.slane %v622_v5, 4  ;;  %v637_v8 = vrot.slane %v636_v6, 4  ;;  %v599_v25 = vrot.slane %v598_v17, 1  ;;  %v613_v26 = vrot.slane %v612_v18, 1 }
 0x169   :  { %v617_v23 = vadd.f32 %v616_v19, %v615_v15  ;;  %v631_v24 = vadd.f32 %v630_v20, %v629_v16  ;;  %v593_v2 = vadd.f32 %v592_v21, %v591_v13  ;;  %v607_v32 = vadd.f32 %v606_v22, %v605_v14  ;;  %v1379_v13 = vld [vmem:[%s1733_s5] sm:$0xff]   ;;  %v1380_v15 = vld [vmem:[%s1733_s5 + $0x8] sm:$0xff]  }
 0x16a   :  { %v624_v27 = vadd.f32 %v623_v7, %v622_v5  ;;  %v638_v28 = vadd.f32 %v637_v8, %v636_v6  ;;  %v600_v35 = vadd.f32 %v599_v25, %v598_v17  ;;  %v614_v36 = vadd.f32 %v613_v26, %v612_v18  ;;  %v1165_v18 = vld [vmem:[%s1734_s4] ss:$0 sm:$0xff] }
 0x16b   :  { %v618_v29 = vrot.slane %v617_v23, 2  ;;  %v632_v30 = vrot.slane %v631_v24, 2  ;;  %v643_v43 = vpack.c.bf16 %v593_v2, %v593_v2  ;;  %v645_v44 = vpack.c.bf16 %v607_v32, %v607_v32 }
 0x16c   :  { %v625_v31 = vrot.slane %v624_v27, 2  ;;  %v639_v0 = vrot.slane %v638_v28, 2  ;;  %v644_v49 = vpack.c.bf16 %v600_v35, %v600_v35  ;;  %v646_v50 = vpack.c.bf16 %v614_v36, %v614_v36 }
 0x16d   :  { %v619_v33 = vadd.f32 %v618_v29, %v617_v23  ;;  %v633_v34 = vadd.f32 %v632_v30, %v631_v24  ;;  %v730_v55 = vunpack.c.l.b16 %v643_v43  ;;  %v732_v56 = vunpack.c.l.b16 %v645_v44 }
 0x16e   :  { %v626_v37 = vadd.f32 %v625_v31, %v624_v27  ;;  %v640_v38 = vadd.f32 %v639_v0, %v638_v28  ;;  %v731_v59 = vunpack.c.l.b16 %v644_v49  ;;  %v733_v61 = vunpack.c.l.b16 %v646_v50  ;;  %v1198_v27 = vld [vmem:[%s1735_s6] ss:$0 sm:$0xff] }
 0x16f   :  { %v620_v39 = vrot.slane %v619_v33, 1  ;;  %v634_v40 = vrot.slane %v633_v34, 1  ;;  %v1383_v14 = vmov 0.0  }
 0x170   :  { %v627_v41 = vrot.slane %v626_v37, 1  ;;  %v641_v42 = vrot.slane %v640_v38, 1  ;;  %1249 = vmatprep.subr.bf16.mxu0 %v1383_v14 }
 0x171   :  { %v621_v45 = vadd.f32 %v620_v39, %v619_v33  ;;  %v635_v46 = vadd.f32 %v634_v40, %v633_v34 }
 0x172   :  { %v628_v47 = vadd.f32 %v627_v41, %v626_v37  ;;  %v642_v48 = vadd.f32 %v641_v42, %v640_v38 }
 0x173   :  { %v647_v51 = vpack.c.bf16 %v621_v45, %v621_v45  ;;  %v649_v52 = vpack.c.bf16 %v635_v46, %v635_v46 }
 0x174   :  { %v648_v53 = vpack.c.bf16 %v628_v47, %v628_v47  ;;  %v650_v54 = vpack.c.bf16 %v642_v48, %v642_v48 }
 0x175   :  { %v734_v57 = vunpack.c.l.b16 %v647_v51  ;;  %v736_v58 = vunpack.c.l.b16 %v649_v52 }
 0x176   :  { %v735_v60 = vunpack.c.l.b16 %v648_v53  ;;  %v737_v62 = vunpack.c.l.b16 %v650_v54 }
 0x177   :  { %v739_v63 = vsel %vm738_vm6, %v734_v57, %v730_v55  ;;  %v741_v1 = vsel %vm738_vm6, %v736_v58, %v732_v56 }
 0x178   :  { %v740_v3 = vsel %vm738_vm6, %v735_v60, %v731_v59  ;;  %v742_v4 = vsel %vm738_vm6, %v737_v62, %v733_v61  ;;  %v743_v11 = vpack.c.b16 %v739_v63, %v739_v63  ;;  %v745_v12 = vpack.c.b16 %v741_v1, %v741_v1 }
 0x179   :  { %v744_v9 = vpack.c.b16 %v740_v3, %v740_v3  ;;  %v746_v10 = vpack.c.b16 %v742_v4, %v742_v4 }
 0x17b   :  { %975 = vmatprep.mubr.bf16.mxu0 %v744_v9  ;;  %1015 = vmatprep.mubr.bf16.mxu1 %v746_v10 }
 0x17c   :  { %976 = vmatmul.mubr.bf16.vlgmr.msra.gmra.mrb[8].mxu0 %v743_v11  ;;  %1016 = vmatmul.mubr.bf16.vlgmr.msra.gmra.mrb[8].mxu1 %v745_v12 }
 0x17d   :  { %1250 = vmatpush3.bf16.msra.mxu0 %v1379_v13  ;;  %1253 = vmatprep.mubr.msk.bf16.mxu0 %vm1384_vm7, %v1383_v14 }
 0x17e   :  { %1251 = vmatprep.subr.bf16.mxu0 %v1383_v14 }
 0x181   :  { %1252 = vmatpush3.bf16.msra.mxu0 %v1380_v15 }
 0x24f   :  { %v1218_v16 = vpop.f32.mrb[8].mxu0  ;;  %v1240_v17 = vpop.f32.mrb[8].mxu1 }
 0x250   :  { %v1219_v5 = vpop.f32.mrb[9].mxu0  ;;  %v1241_v6 = vpop.f32.mrb[9].mxu1 }
 0x251   :  { %v1220_v19 = vadd.f32 %v1219_v5, %v1218_v16  ;;  %v1242_v20 = vadd.f32 %v1241_v6, %v1240_v17  ;;  %v1221_v7 = vpop.f32.mrb[10].mxu0  ;;  %v1243_v8 = vpop.f32.mrb[10].mxu1 }
 0x252   :  { %v1222_v21 = vpop.f32.mrb[11].mxu0  ;;  %v1244_v22 = vpop.f32.mrb[11].mxu1 }
 0x253   :  { %v978_v23 = vadd.f32 %v1220_v19, %v1165_v18 }
 0x255   :  { %v1018_v24 = vadd.f32 %v1242_v20, %v978_v23 }
 0x257   :  { %v1023_v25 = vmax.f32 %v1018_v24, 0.0 }
 0x259   :  { %v1024_v26 = vpack.c.bf16 %v1023_v25, %v1023_v25 }
 0x25b   :  { %1254 = vmatmul.mubr.msk.bf16.vlgmr.msra.gmra.mrb[12].mxu0 %vm1048_vm8, %v1024_v26 }
 0x32e   :  { %v1086_v28 = vpop.f32.mrb[12].mxu0 }
 0x32f   :  { %v1087_v29 = vadd.f32 %v1198_v27, %v1086_v28  ;;  %v1255_v30 = vpop.f32.mrb[13].mxu0 }
 0x330   :  { %v1089_v31 = vpop.f32.mrb[14].mxu0 }
 0x331   :  { %v1093_v0 = vsel %vm1092_vm9, %v1087_v29, 0.0  ;;  %v1256_v2 = vpop.f32.mrb[15].mxu0 }
 0x332   :  { %1094 = vst [vmem:[%s1736_s7] sm:$0xff] %v1093_v0 }

</bundles_post_ra>
